<compile_context>
chip_gen: v7x
topology: tpu7x:2x2x1
jax: 0.10.0
libtpu: 0.0.40
codegen_flags: <defaults>
</compile_context>

<pallas_src>
import functools

import jax
import jax.numpy as jnp
from jax import lax
from jax.experimental import pallas as pl
from jax.experimental.pallas import tpu as pltpu


# ----------------------------------------------------------------------------
# Packed weight-slab layout (all row offsets are multiples of 8 sublanes)
# ----------------------------------------------------------------------------
def _slab_layout(H):
    assert H % 8 == 0
    r_attw = 0              # (H, 4H)   attention weights, col blocks [q_num|q|hs_num|hs]
    r_attb = H              # (H, 4)    attention biases (lanes 0:4)
    r_p = 2 * H             # (5H, 4H)  fused projection (cols 0:H -> h_num, H:2H -> h_op)
    r_pb = 7 * H            # (1, 4H)   fused projection bias
    r_ow = 7 * H + 8        # (4H, 4H)  merged output head (cols 0:2 op_num, 2:13 op)
    r_ob = 11 * H + 8       # (1, 4H)   merged output bias
    total = 11 * H + 16
    return r_attw, r_attb, r_p, r_pb, r_ow, r_ob, total


def pack_op_predictor_heads_params(attW, attb, projW, projb,
                                   outnW, outnb, outW, outb, *, use_hs=True):
    """One-time weight restructuring (cache the result; do NOT run per forward).

    attW/attb stacked in order [q_num_att, hs_num_att, q_att, hs_att];
    projW/projb in order [op_num_out_q, op_num_out_hs, op_num_out_c,
                          op_out_q, op_out_hs, op_out_c]; PyTorch (out, in) layout.
    """
    H = attW.shape[-1]
    assert H % 32 == 0, "packing assumes 4*H is a multiple of 128 lanes"
    W = 4 * H
    f32 = jnp.float32
    u = float(bool(use_hs))
    r_attw, r_attb, r_p, r_pb, r_ow, r_ob, total = _slab_layout(H)

    slab = jnp.zeros((total, W), f32)

    # fused attention: cw = col_emb @ attW_all, head blocks [q_num | q | hs_num | hs]
    attW_all = jnp.concatenate([attW[0], attW[2], attW[1], attW[3]], axis=1).astype(f32)
    attb_all = jnp.stack([attb[0], attb[2], attb[1], attb[3]], axis=1).astype(f32)  # (H, 4)
    slab = slab.at[r_attw:r_attw + H, :].set(attW_all)
    slab = slab.at[r_attb:r_attb + H, 0:4].set(attb_all)

    # fused projection on z = [w_qnum | w_q | w_hsnum | w_hs | col_emb]
    P = jnp.zeros((5 * H, W), f32)
    P = P.at[0 * H:1 * H, 0:H].set(projW[0].T.astype(f32))           # q_num  -> h_num
    P = P.at[1 * H:2 * H, H:2 * H].set(projW[3].T.astype(f32))       # q      -> h_op
    P = P.at[2 * H:3 * H, 0:H].set((u * projW[1].T).astype(f32))     # hs_num -> h_num
    P = P.at[3 * H:4 * H, H:2 * H].set((u * projW[4].T).astype(f32))  # hs    -> h_op
    P = P.at[4 * H:5 * H, 0:H].set(projW[2].T.astype(f32))           # col    -> h_num
    P = P.at[4 * H:5 * H, H:2 * H].set(projW[5].T.astype(f32))       # col    -> h_op
    slab = slab.at[r_p:r_p + 5 * H, :].set(P)

    pb = jnp.zeros((W,), f32)
    pb = pb.at[0:H].set((projb[0] + u * projb[1] + projb[2]).astype(f32))
    pb = pb.at[H:2 * H].set((projb[3] + u * projb[4] + projb[5]).astype(f32))
    slab = slab.at[r_pb, :].set(pb)

    # merged output head: cols [0:2]=op_num logits, [2:13]=op logits, rest zero
    OW = jnp.zeros((W, W), f32)
    OW = OW.at[0:H, 0:2].set(outnW.T.astype(f32))
    OW = OW.at[H:2 * H, 2:13].set(outW.T.astype(f32))
    slab = slab.at[r_ow:r_ow + W, :].set(OW)
    ob = jnp.zeros((W,), f32).at[0:2].set(outnb.astype(f32)).at[2:13].set(outb.astype(f32))
    slab = slab.at[r_ob, :].set(ob)
    return slab


# ----------------------------------------------------------------------------
# Pallas kernel: fused attention heads + projections + output MLPs
# (whole batch, single invocation, 5 input DMAs, lane-dense (B, 4H) output)
# ----------------------------------------------------------------------------
def _heads_kernel(lens_ref, q_ref, hs_ref, col_ref, slab_ref, out_ref, x_ref, z_ref):
    B, Lq, H = q_ref.shape
    Lh = hs_ref.shape[1]
    L = Lq + Lh
    W = 4 * H
    r_attw, r_attb, r_p, r_pb, r_ow, r_ob, _ = _slab_layout(H)

    c = col_ref[...]                                   # (B, H)
    lens = lens_ref[...]                               # (B, 2) int32: [qlen, hslen]

    # merged attention stream: t in [0, Lq) -> question, [Lq, L) -> history
    x_ref[:, pl.ds(0, Lq), :] = q_ref[...]
    x_ref[:, pl.ds(Lq, Lh), :] = hs_ref[...]
    x = x_ref[...]                                     # (B, L, H)

    # all 4 head vectors (q_num, q, hs_num, hs) from one lane-dense matmul
    cw4 = jnp.dot(c, slab_ref[pl.ds(r_attw, H), :],
                  preferred_element_type=jnp.float32).reshape(B, 4, H)
    cb = jnp.dot(c, slab_ref[pl.ds(r_attb, H), pl.ds(0, 4)],
                 preferred_element_type=jnp.float32)   # (B, 4)

    # one batched score matmul for all heads over the merged stream
    s = jnp.einsum('bkh,bth->bkt', cw4, x, preferred_element_type=jnp.float32)
    s = s + cb[:, :, None]                             # (B, 4, L)

    t_idx = lax.broadcasted_iota(jnp.int32, (B, 4, L), 2)
    k_idx = lax.broadcasted_iota(jnp.int32, (B, 4, L), 1)
    is_q_head = k_idx < 2
    qlen = lens[:, 0].reshape(B, 1, 1)
    hslen = lens[:, 1].reshape(B, 1, 1)
    limit = jnp.where(is_q_head, qlen, Lq + hslen)
    s = jnp.where(t_idx < limit, s, -100.0)            # -100 length padding (module parity)
    s = s - jnp.max(s, axis=-1, keepdims=True)
    in_stream = (t_idx < Lq) == is_q_head              # q heads see q, hs heads see hs
    e = jnp.where(in_stream, jnp.exp(s), 0.0)          # cross-stream mass exactly zero
    p = e * pl.reciprocal(jnp.sum(e, axis=-1, keepdims=True), approx=True)

    # weighted sums for all 4 heads in one batched matmul
    w4 = jnp.einsum('bkt,bth->bkh', p, x, preferred_element_type=jnp.float32)  # (B,4,H)

    # z = [q_weighted_num | q_weighted | hs_weighted_num | hs_weighted | col_emb]
    z_ref[:, pl.ds(0, 4 * H)] = w4.reshape(B, 4 * H)
    z_ref[:, pl.ds(4 * H, H)] = c
    z = z_ref[...]                                     # (B, 5H)

    # single fused projection (both MLP branches), then merged output head
    h = jnp.tanh(jnp.dot(z, slab_ref[pl.ds(r_p, 5 * H), :],
                         preferred_element_type=jnp.float32)
                 + slab_ref[pl.ds(r_pb, 1), :])        # (B, 4H), lanes [2H:] are 0
    out_ref[...] = (jnp.dot(h, slab_ref[pl.ds(r_ow, W), :],
                            preferred_element_type=jnp.float32)
                    + slab_ref[pl.ds(r_ob, 1), :])     # lane-dense (B, 4H) store


def op_predictor_heads(q_enc, hs_enc, col_emb, lens, slab):
    """Per-call wrapper: lens is (B,2) int32 [q_len, hs_len]; slab is the packed
    weight slab from pack_op_predictor_heads_params (built once, reused)."""
    B, Lq, H = q_enc.shape
    Lh = hs_enc.shape[1]
    W = 4 * H
    vmem = pl.BlockSpec(memory_space=pltpu.MemorySpace.VMEM)
    out = pl.pallas_call(
        _heads_kernel,
        out_shape=jax.ShapeDtypeStruct((B, W), jnp.float32),
        in_specs=[vmem] * 5,
        out_specs=vmem,
        scratch_shapes=[pltpu.VMEM((B, Lq + Lh, H), jnp.float32),
                        pltpu.VMEM((B, 5 * H), jnp.float32)],
    )(lens, q_enc, hs_enc, col_emb, slab)
    return out[:, 0:2], out[:, 2:13]


# ----------------------------------------------------------------------------
# Pure-JAX reference of the head math (mirrors the PyTorch module)
# ----------------------------------------------------------------------------
def op_predictor_heads_ref(q_enc, hs_enc, col_emb, q_len, hs_len,
                           attW, attb, projW, projb,
                           outnW, outnb, outW, outb, *, use_hs=True):
    def att(x, xlen, W, b):
        v = jnp.einsum('bh,bth->bt', col_emb, x @ W.T + b)
        idx = jnp.arange(x.shape[1])[None, :]
        v = jnp.where(idx < xlen[:, None], v, -100.0)
        p = jax.nn.softmax(v, axis=-1)
        return jnp.einsum('bt,bth->bh', p, x)

    qwn = att(q_enc, q_len, attW[0], attb[0])
    hswn = att(hs_enc, hs_len, attW[1], attb[1])
    qw = att(q_enc, q_len, attW[2], attb[2])
    hsw = att(hs_enc, hs_len, attW[3], attb[3])
    u = float(bool(use_hs))
    h_num = jnp.tanh(qwn @ projW[0].T + projb[0]
                     + u * (hswn @ projW[1].T + projb[1])
                     + col_emb @ projW[2].T + projb[2])
    h_op = jnp.tanh(qw @ projW[3].T + projb[3]
                    + u * (hsw @ projW[4].T + projb[4])
                    + col_emb @ projW[5].T + projb[5])
    return h_num @ outnW.T + outnb, h_op @ outW.T + outb


# ----------------------------------------------------------------------------
# Plain-JAX glue: bidirectional LSTM encoders (PyTorch gate order i,f,g,o)
# TODO(synk): sequential LSTM recurrence kept in lax.scan (no clean Pallas win);
#             inter-layer dropout is a no-op in eval / deterministic forward.
# ----------------------------------------------------------------------------
def _lstm_scan(x, Wih, Whh, bih, bhh):
    B = x.shape[0]
    Hh = Whh.shape[1]

    def step(carry, xt):
        h, c = carry
        gates = xt @ Wih.T + bih + h @ Whh.T + bhh
        i, f, g, o = jnp.split(gates, 4, axis=-1)
        c = jax.nn.sigmoid(f) * c + jax.nn.sigmoid(i) * jnp.tanh(g)
        h = jax.nn.sigmoid(o) * jnp.tanh(c)
        return (h, c), h

    init = (jnp.zeros((B, Hh), x.dtype), jnp.zeros((B, Hh), x.dtype))
    _, hs = lax.scan(step, init, jnp.swapaxes(x, 0, 1))
    return jnp.swapaxes(hs, 0, 1)


def _reverse_within_length(x, lens):
    L = x.shape[1]
    idx = jnp.arange(L)[None, :]
    rev_idx = jnp.where(idx < lens[:, None], lens[:, None] - 1 - idx, idx)
    rev_idx = jnp.broadcast_to(rev_idx[:, :, None], x.shape)
    return jnp.take_along_axis(x, rev_idx, axis=1)


def run_bilstm(layers, x, lens):
    L = x.shape[1]
    valid = (jnp.arange(L)[None, :] < lens[:, None]).astype(x.dtype)[..., None]
    out = x * valid
    for fwd, bwd in layers:
        out_f = _lstm_scan(out, *fwd)
        out_b = _lstm_scan(_reverse_within_length(out, lens), *bwd)
        out_b = _reverse_within_length(out_b, lens)
        out = jnp.concatenate([out_f, out_b], axis=-1) * valid   # packed-sequence zeros
    return out


def col_name_encode(col_lstm_layers, col_emb_var, col_name_len, col_len, max_col_len, N_h):
    name_hidden = run_bilstm(col_lstm_layers, col_emb_var, col_name_len)        # (TC, Ln, N_h)
    name_out = name_hidden[jnp.arange(name_hidden.shape[0]), col_name_len - 1]  # (TC, N_h)
    B = len(col_len)
    col_enc = jnp.zeros((B, max_col_len, N_h), jnp.float32)
    st = 0
    for b, cl in enumerate(col_len):
        col_enc = col_enc.at[b, :cl].set(name_out[st:st + cl])
        st += cl
    return col_enc


# ----------------------------------------------------------------------------
# Deterministic parameter init
# ----------------------------------------------------------------------------
def init_lstm(key, in_size, hidden, depth):
    layers = []
    for l in range(depth):
        isz = in_size if l == 0 else 2 * hidden
        dirs = []
        for _ in range(2):
            key, k1, k2, k3, k4 = jax.random.split(key, 5)
            dirs.append((jax.random.normal(k1, (4 * hidden, isz), jnp.float32) * 0.1,
                         jax.random.normal(k2, (4 * hidden, hidden), jnp.float32) * 0.1,
                         jax.random.normal(k3, (4 * hidden,), jnp.float32) * 0.1,
                         jax.random.normal(k4, (4 * hidden,), jnp.float32) * 0.1))
        layers.append(tuple(dirs))
    return layers, key


def init_linear(key, out_dim, in_dim):
    k1, k2, key = jax.random.split(key, 3)
    W = jax.random.normal(k1, (out_dim, in_dim), jnp.float32) * 0.1
    b = jax.random.normal(k2, (out_dim,), jnp.float32) * 0.1
    return W, b, key


if __name__ == "__main__":
    key = jax.random.PRNGKey(0)

    # Module config (N_col=0 -> column/hs embeddings also have dim N_word)
    N_word, N_h, N_depth = 16, 32, 2
    use_hs = True
    B, Lq, Lh = 2, 8, 6
    max_col_len, max_name_len = 5, 3

    q_len = [8, 5]
    hs_len = [6, 4]
    col_len = [5, 3]
    col_name_len = [2, 3, 1, 2, 3, 1, 2, 2]   # sum(col_len) = 8 column names
    gt_col = [2, 1]

    key, kq, khs, kcol = jax.random.split(key, 4)
    q_emb_var = jax.random.normal(kq, (B, Lq, N_word), jnp.float32)
    hs_emb_var = jax.random.normal(khs, (B, Lh, N_word), jnp.float32)
    col_emb_var = jax.random.normal(kcol, (sum(col_len), max_name_len, N_word), jnp.float32)

    # LSTM parameters
    q_lstm, key = init_lstm(key, N_word, N_h // 2, N_depth)
    hs_lstm, key = init_lstm(key, N_word, N_h // 2, N_depth)
    col_lstm, key = init_lstm(key, N_word, N_h // 2, N_depth)

    # Attention linears: [q_num_att, hs_num_att, q_att, hs_att]
    attW_l, attb_l = [], []
    for _ in range(4):
        W, b, key = init_linear(key, N_h, N_h)
        attW_l.append(W); attb_l.append(b)
    attW, attb = jnp.stack(attW_l), jnp.stack(attb_l)

    # Projections: [op_num_out_q, op_num_out_hs, op_num_out_c, op_out_q, op_out_hs, op_out_c]
    projW_l, projb_l = [], []
    for _ in range(6):
        W, b, key = init_linear(key, N_h, N_h)
        projW_l.append(W); projb_l.append(b)
    projW, projb = jnp.stack(projW_l), jnp.stack(projb_l)

    # Output heads: op_num_out -> (2,), op_out -> (11,)
    outnW, outnb, key = init_linear(key, 2, N_h)
    outW, outb, key = init_linear(key, 11, N_h)

    # ---- ONE-TIME weight packing (hoisted out of the forward path) ----------
    slab = pack_op_predictor_heads_params(
        attW, attb, projW, projb, outnW, outnb, outW, outb, use_hs=use_hs)
    jax.block_until_ready(slab)

    # Encoders (glue)
    q_len_arr = jnp.array(q_len, jnp.int32)
    hs_len_arr = jnp.array(hs_len, jnp.int32)
    cnl_arr = jnp.array(col_name_len, jnp.int32)
    lens = jnp.stack([q_len_arr, hs_len_arr], axis=1)                # (B, 2) int32

    q_enc = run_bilstm(q_lstm, q_emb_var, q_len_arr)                 # (B, Lq, N_h)
    hs_enc = run_bilstm(hs_lstm, hs_emb_var, hs_len_arr)             # (B, Lh, N_h)
    col_enc = col_name_encode(col_lstm, col_emb_var, cnl_arr, col_len, max_col_len, N_h)
    col_emb = col_enc[jnp.arange(B), jnp.array(gt_col)]              # (B, N_h)

    # Pallas hot path (single invocation, whole batch, 5 input DMAs)
    op_num_score, op_score = op_predictor_heads(q_enc, hs_enc, col_emb, lens, slab)
    jax.block_until_ready((op_num_score, op_score))

    assert op_num_score.shape == (B, 2) and op_score.shape == (B, 11)

    # Validate restructured weights against a pure-JAX reference of the module.
    ref_num, ref_op = op_predictor_heads_ref(
        q_enc, hs_enc, col_emb, q_len_arr, hs_len_arr,
        attW, attb, projW, projb, outnW, outnb, outW, outb, use_hs=use_hs)
    assert bool(jnp.allclose(op_num_score, ref_num, atol=2e-2, rtol=2e-2))
    assert bool(jnp.allclose(op_score, ref_op, atol=2e-2, rtol=2e-2))

    print("KERNEL_OK")
</pallas_src>

<mosaic_0001>
module attributes {stable_mosaic.version = 11 : i64} {
  func.func @_heads_kernel(%arg0: memref<2x2xi32, #tpu.memory_space<vmem>>, %arg1: memref<2x8x32xf32, #tpu.memory_space<vmem>>, %arg2: memref<2x6x32xf32, #tpu.memory_space<vmem>>, %arg3: memref<2x32xf32, #tpu.memory_space<vmem>>, %arg4: memref<368x128xf32, #tpu.memory_space<vmem>>, %arg5: memref<2x128xf32, #tpu.memory_space<vmem>>, %arg6: memref<2x14x32xf32, #tpu.memory_space<vmem>>, %arg7: memref<2x160xf32, #tpu.memory_space<vmem>>) attributes {dimension_semantics = [], scalar_prefetch = 0 : i64, scratch_operands = 2 : i64, tpu.core_type = #tpu.core_type<tc>} {
    %c0 = arith.constant 0 : index
    %c0_0 = arith.constant 0 : index
    %0 = vector.load %arg3[%c0, %c0_0] : memref<2x32xf32, #tpu.memory_space<vmem>>, vector<2x32xf32>
    %c0_1 = arith.constant 0 : index
    %c0_2 = arith.constant 0 : index
    %1 = vector.load %arg0[%c0_1, %c0_2] : memref<2x2xi32, #tpu.memory_space<vmem>>, vector<2x2xi32>
    %c0_3 = arith.constant 0 : index
    %c0_4 = arith.constant 0 : index
    %c0_5 = arith.constant 0 : index
    %2 = vector.load %arg1[%c0_3, %c0_4, %c0_5] : memref<2x8x32xf32, #tpu.memory_space<vmem>>, vector<2x8x32xf32>
    %c0_6 = arith.constant 0 : index
    %c0_7 = arith.constant 0 : index
    %c0_8 = arith.constant 0 : index
    %3 = vector.load %arg6[%c0_6, %c0_7, %c0_8] : memref<2x14x32xf32, #tpu.memory_space<vmem>>, vector<2x8x32xf32>
    tpu.vector_store %arg6[%c0_6, %c0_7, %c0_8], %2 {strides = array<i32>} : memref<2x14x32xf32, #tpu.memory_space<vmem>>, vector<2x8x32xf32>,
    %c0_9 = arith.constant 0 : index
    %c0_10 = arith.constant 0 : index
    %c0_11 = arith.constant 0 : index
    %4 = vector.load %arg2[%c0_9, %c0_10, %c0_11] : memref<2x6x32xf32, #tpu.memory_space<vmem>>, vector<2x6x32xf32>
    %c0_12 = arith.constant 0 : index
    %c8 = arith.constant 8 : index
    %c0_13 = arith.constant 0 : index
    %5 = vector.load %arg6[%c0_12, %c8, %c0_13] : memref<2x14x32xf32, #tpu.memory_space<vmem>>, vector<2x6x32xf32>
    tpu.vector_store %arg6[%c0_12, %c8, %c0_13], %4 {strides = array<i32>} : memref<2x14x32xf32, #tpu.memory_space<vmem>>, vector<2x6x32xf32>,
    %c0_14 = arith.constant 0 : index
    %c0_15 = arith.constant 0 : index
    %c0_16 = arith.constant 0 : index
    %6 = vector.load %arg6[%c0_14, %c0_15, %c0_16] : memref<2x14x32xf32, #tpu.memory_space<vmem>>, vector<2x14x32xf32>
    %c0_17 = arith.constant 0 : index
    %c0_18 = arith.constant 0 : index
    %7 = vector.load %arg4[%c0_17, %c0_18] : memref<368x128xf32, #tpu.memory_space<vmem>>, vector<32x128xf32>
    %cst = arith.constant dense<0.000000e+00> : vector<2x128xf32>
    %8 = tpu.matmul %0, %7, %cst {dimension_numbers = #tpu.dot_dimension_numbers<[1], [0], [0], [1], [0, 0, 1, 1], [], []>} : vector<2x32xf32>, vector<32x128xf32>, vector<2x128xf32> -> vector<2x128xf32>
    %9 = vector.shape_cast %8 : vector<2x128xf32> to vector<2x4x32xf32>
    %c32 = arith.constant 32 : index
    %c0_19 = arith.constant 0 : index
    %10 = vector.load %arg4[%c32, %c0_19] : memref<368x128xf32, #tpu.memory_space<vmem>>, vector<32x4xf32>
    %cst_20 = arith.constant dense<0.000000e+00> : vector<2x4xf32>
    %11 = tpu.matmul %0, %10, %cst_20 {dimension_numbers = #tpu.dot_dimension_numbers<[1], [0], [0], [1], [0, 0, 1, 1], [], []>} : vector<2x32xf32>, vector<32x4xf32>, vector<2x4xf32> -> vector<2x4xf32>
    "tpu.trace_start"() <{level = 10 : i32, message = "bkh,bth->bkt"}> : () -> ()
    %cst_21 = arith.constant dense<0.000000e+00> : vector<2x4x14xf32>
    %12 = tpu.matmul %9, %6, %cst_21 {dimension_numbers = #tpu.dot_dimension_numbers<[2], [2], [1], [1], [0, 0, 0, 1, 1, 1], [0], [0]>} : vector<2x4x32xf32>, vector<2x14x32xf32>, vector<2x4x14xf32> -> vector<2x4x14xf32>
    "tpu.trace_stop"() : () -> ()
    %13 = vector.shape_cast %11 : vector<2x4xf32> to vector<2x4x1xf32>
    %14 = vector.broadcast %13 : vector<2x4x1xf32> to vector<2x4x14xf32>
    %15 = arith.addf %12, %14 : vector<2x4x14xf32>
    %16 = tpu.iota {dimensions = array<i32: 2>} : vector<2x4x14xi32>
    %17 = tpu.iota {dimensions = array<i32: 1>} : vector<2x4x14xi32>
    %c2_i32 = arith.constant 2 : i32
    %18 = vector.broadcast %c2_i32 : i32 to vector<2x4x14xi32>
    %19 = arith.cmpi slt, %17, %18 : vector<2x4x14xi32>
    %20 = vector.extract_strided_slice %1 {offsets = [0, 0], sizes = [2, 1], strides = [1, 1]} : vector<2x2xi32> to vector<2x1xi32>
    %21 = vector.shape_cast %20 : vector<2x1xi32> to vector<2xi32>
    %22 = vector.shape_cast %21 : vector<2xi32> to vector<2x1x1xi32>
    %23 = vector.extract_strided_slice %1 {offsets = [0, 1], sizes = [2, 1], strides = [1, 1]} : vector<2x2xi32> to vector<2x1xi32>
    %24 = vector.shape_cast %23 : vector<2x1xi32> to vector<2xi32>
    %25 = vector.shape_cast %24 : vector<2xi32> to vector<2x1x1xi32>
    %c8_i32 = arith.constant 8 : i32
    %26 = vector.broadcast %c8_i32 : i32 to vector<2x1x1xi32>
    %27 = arith.addi %26, %25 : vector<2x1x1xi32>
    %28 = vector.shape_cast %22 : vector<2x1x1xi32> to vector<2x1x1xi32>
    %29 = vector.broadcast %28 : vector<2x1x1xi32> to vector<2x4x14xi32>
    %30 = vector.shape_cast %27 : vector<2x1x1xi32> to vector<2x1x1xi32>
    %31 = vector.broadcast %30 : vector<2x1x1xi32> to vector<2x4x14xi32>
    %32 = arith.select %19, %29, %31 : vector<2x4x14xi1>, vector<2x4x14xi32>
    %33 = arith.cmpi slt, %16, %32 : vector<2x4x14xi32>
    %cst_22 = arith.constant -1.000000e+02 : f32
    %34 = vector.broadcast %cst_22 : f32 to vector<2x4x14xf32>
    %35 = arith.select %33, %15, %34 : vector<2x4x14xi1>, vector<2x4x14xf32>
    %cst_23 = arith.constant dense<0xFF800000> : vector<2x4xf32>
    %36 = vector.multi_reduction <maximumf>, %35, %cst_23 [2] : vector<2x4x14xf32> to vector<2x4xf32>
    %37 = vector.shape_cast %36 : vector<2x4xf32> to vector<2x4x1xf32>
    %38 = vector.broadcast %37 : vector<2x4x1xf32> to vector<2x4x14xf32>
    %39 = arith.subf %35, %38 : vector<2x4x14xf32>
    %c8_i32_24 = arith.constant 8 : i32
    %40 = vector.broadcast %c8_i32_24 : i32 to vector<2x4x14xi32>
    %41 = arith.cmpi slt, %16, %40 : vector<2x4x14xi32>
    %42 = arith.xori %41, %19 : vector<2x4x14xi1>
    %cst_25 = arith.constant dense<true> : vector<2x4x14xi1>
    %43 = arith.xori %42, %cst_25 : vector<2x4x14xi1>
    %44 = math.exp %39 : vector<2x4x14xf32>
    %cst_26 = arith.constant 0.000000e+00 : f32
    %45 = vector.broadcast %cst_26 : f32 to vector<2x4x14xf32>
    %46 = arith.select %43, %44, %45 : vector<2x4x14xi1>, vector<2x4x14xf32>
    %cst_27 = arith.constant dense<0.000000e+00> : vector<2x4xf32>
    %47 = vector.multi_reduction <add>, %46, %cst_27 [2] : vector<2x4x14xf32> to vector<2x4xf32>
    %48 = vector.shape_cast %47 : vector<2x4xf32> to vector<2x4x1xf32>
    %49 = tpu.reciprocal %48 {approx = true} : vector<2x4x1xf32> -> vector<2x4x1xf32>
    %50 = vector.broadcast %49 : vector<2x4x1xf32> to vector<2x4x14xf32>
    %51 = arith.mulf %46, %50 : vector<2x4x14xf32>
    "tpu.trace_start"() <{level = 10 : i32, message = "bkt,bth->bkh"}> : () -> ()
    %cst_28 = arith.constant dense<0.000000e+00> : vector<2x4x32xf32>
    %52 = tpu.matmul %51, %6, %cst_28 {dimension_numbers = #tpu.dot_dimension_numbers<[2], [1], [1], [2], [0, 0, 0, 1, 1, 2], [0], [0]>} : vector<2x4x14xf32>, vector<2x14x32xf32>, vector<2x4x32xf32> -> vector<2x4x32xf32>
    "tpu.trace_stop"() : () -> ()
    %53 = vector.shape_cast %52 : vector<2x4x32xf32> to vector<2x128xf32>
    %c0_29 = arith.constant 0 : index
    %c0_30 = arith.constant 0 : index
    %54 = vector.load %arg7[%c0_29, %c0_30] : memref<2x160xf32, #tpu.memory_space<vmem>>, vector<2x128xf32>
    tpu.vector_store %arg7[%c0_29, %c0_30], %53 {strides = array<i32>} : memref<2x160xf32, #tpu.memory_space<vmem>>, vector<2x128xf32>,
    %c0_31 = arith.constant 0 : index
    %c128 = arith.constant 128 : index
    %55 = vector.load %arg7[%c0_31, %c128] : memref<2x160xf32, #tpu.memory_space<vmem>>, vector<2x32xf32>
    tpu.vector_store %arg7[%c0_31, %c128], %0 {strides = array<i32>} : memref<2x160xf32, #tpu.memory_space<vmem>>, vector<2x32xf32>,
    %c0_32 = arith.constant 0 : index
    %c0_33 = arith.constant 0 : index
    %56 = vector.load %arg7[%c0_32, %c0_33] : memref<2x160xf32, #tpu.memory_space<vmem>>, vector<2x160xf32>
    %c64 = arith.constant 64 : index
    %c0_34 = arith.constant 0 : index
    %57 = vector.load %arg4[%c64, %c0_34] : memref<368x128xf32, #tpu.memory_space<vmem>>, vector<160x128xf32>
    %cst_35 = arith.constant dense<0.000000e+00> : vector<2x128xf32>
    %58 = tpu.matmul %56, %57, %cst_35 {dimension_numbers = #tpu.dot_dimension_numbers<[1], [0], [0], [1], [0, 0, 1, 1], [], []>} : vector<2x160xf32>, vector<160x128xf32>, vector<2x128xf32> -> vector<2x128xf32>
    %c224 = arith.constant 224 : index
    %c0_36 = arith.constant 0 : index
    %59 = vector.load %arg4[%c224, %c0_36] : memref<368x128xf32, #tpu.memory_space<vmem>>, vector<1x128xf32>
    %60 = vector.broadcast %59 : vector<1x128xf32> to vector<2x128xf32>
    %61 = arith.addf %58, %60 : vector<2x128xf32>
    %62 = math.tanh %61 : vector<2x128xf32>
    %c232 = arith.constant 232 : index
    %c0_37 = arith.constant 0 : index
    %63 = vector.load %arg4[%c232, %c0_37] : memref<368x128xf32, #tpu.memory_space<vmem>>, vector<128x128xf32>
    %cst_38 = arith.constant dense<0.000000e+00> : vector<2x128xf32>
    %64 = tpu.matmul %62, %63, %cst_38 {dimension_numbers = #tpu.dot_dimension_numbers<[1], [0], [0], [1], [0, 0, 1, 1], [], []>} : vector<2x128xf32>, vector<128x128xf32>, vector<2x128xf32> -> vector<2x128xf32>
    %c360 = arith.constant 360 : index
    %c0_39 = arith.constant 0 : index
    %65 = vector.load %arg4[%c360, %c0_39] : memref<368x128xf32, #tpu.memory_space<vmem>>, vector<1x128xf32>
    %66 = vector.broadcast %65 : vector<1x128xf32> to vector<2x128xf32>
    %67 = arith.addf %64, %66 : vector<2x128xf32>
    %c0_40 = arith.constant 0 : index
    %c0_41 = arith.constant 0 : index
    %68 = vector.load %arg5[%c0_40, %c0_41] : memref<2x128xf32, #tpu.memory_space<vmem>>, vector<2x128xf32>
    tpu.vector_store %arg5[%c0_40, %c0_41], %67 {strides = array<i32>} : memref<2x128xf32, #tpu.memory_space<vmem>>, vector<2x128xf32>,
    return
  }
}

</mosaic_0001>

<bundles_post_ra>
// kernel: tpu_custom_call.1
= control target key start
LH: loop header
LB: loop body
LE: loop exit
PB: predicated region body
PF: predicated region fallthrough
CT: control target
= control target key end

     0   :  { %10 = vsyncpa [#allocation5], 0  ;;  %s1412_s0 = inlined_call_operand.vmem [shape: s32[2,2], index: 0, kind: input, shape index: {}]   ;;  %s1413_s1 = inlined_call_operand.vmem [shape: f32[2,8,32], index: 1, kind: input, shape index: {}]   ;;  %s1414_s2 = inlined_call_operand.vmem [shape: f32[2,6,32], index: 2, kind: input, shape index: {}]   ;;  %s1415_s3 = inlined_call_operand.vmem [shape: f32[2,32], index: 3, kind: input, shape index: {}]   ;;  %s1416_s4 = inlined_call_operand.hbm [shape: f32[368,128], index: 4, kind: input, shape index: {}]   ;;  %s1417_s5 = inlined_call_operand.hbm [shape: f32[2,128], index: 5, kind: output, shape index: {}]  }
   0x1   :  { %11 = vsyncpa [#allocation6], 0  ;;  %s1220_s18 = smov [#allocation4]   ;;  %s1172_s22 = scalar_lea.hbm %s1416_s4, 5888 }
   0x2   :  { %s25_s19 = sshll.u32 %s1220_s18, 4  ;;  %p1173_p0 = scmp.ne.s32.totalorder %s1416_s4, %s1172_s22  ;;  %s26_s19 = int_to_ptr.vmem [resolvable:$true] %s25_s19 }
   0x3   :  { %p1176_p1 = scmp.lt.u32.totalorder %s1172_s22, %s1416_s4 }
   0x5   :  { %p1178_p2 = pnand %p1176_p1, %p1173_p0 }
   0x7   :  { %1181 = shalt.err (!%p1178_p2)
}
   0x8   :  { %s1182_s27 = scalar_lea.vmem %s26_s19, 5888  ;;  %p1187_p4 = scmp.lt.s32.totalorder %s26_s19, %s26_s19 }
   0x9   :  { %p1183_p3 = scmp.ne.s32.totalorder %s26_s19, %s1182_s27  ;;  %p1188_p5 = scmp.lt.s32.totalorder %s1182_s27, %s1182_s27 }
   0xb   :  { %p1189_p6 = por %p1188_p5, %p1187_p4 }
   0xd   :  { %p1190_p7 = pnand %p1189_p6, %p1183_p3 }
   0xf   :  { %1193 = shalt.err (!%p1190_p7)
}
  0x10   :  { %s1221_s28 = smov 128   ;;  %s1222_s29 = smov 8  }
  0x11   :  { %31 = dma.hbm_to_vmem [thread:$0]  %s1416_s4, 5888, %s26_s19, [#allocation5], %s1221_s28, %s1221_s28, %s1222_s29  }
  0x12   :  { %1216 = dma.done.wait [#allocation5], 5888  }
  0x13   :  { %1217 = vsyncadd [#allocation5], 4294961408  ;;  %v1223_v0 = vmov 0.0|0.0   ;;  %vm1224_vm0 = vmmov 0   ;;  %v1225_v1 = vmov 0.0   ;;  %vm702_vm1 = vcmask 254976  }
  0x14   :  { %1061 = vmatprep.subr.bf16.mxu0 %v1223_v0  ;;  %984 = vmatprep.mubr.msk.f32.mxu0 %vm1224_vm0, %v1225_v1  ;;  %v51_v2 = vld [vmem:[#allocation4] sm:$0xff]  ;;  %v52_v3 = vld [vmem:[#allocation4 + $0x8] sm:$0xff]  ;;  %v53_v4 = vld [vmem:[#allocation4 + $0x10] sm:$0xff]  ;;  %vm39_vm2 = vcmask 261120   ;;  %vm44_vm3 = vcmask 259072   ;;  %s1227_s14 = smov 96   ;;  %v142_v27 = vlaneseq }
  0x15   :  { %1067 = vmatprep.subr.bf16.mxu1 %v1223_v0  ;;  %995 = vmatprep.mubr.msk.f32.mxu1 %vm1224_vm0, %v1225_v1  ;;  %v1062_v5 = vpack.c.bf16 %v52_v3, %v51_v2  ;;  %v54_v6 = vld [vmem:[#allocation4 + $0x18] sm:$0xff]  ;;  %v38_v9 = vld [vmem:[%s1413_s1 + $0x8] sm:$0xff]  ;;  %v165_v14 = vld [vmem:[#allocation4 + $0x30] sm:$0xff]  ;;  %v1228_v28 = vmov 0   ;;  %v1229_v29 = vmov 1966171168  }
  0x16   :  { %v35_v7 = vld [vmem:[%s1415_s3] sm:$0x3]  ;;  %v1065_v10 = vpack.c.bf16 %v54_v6, %v53_v4  ;;  %41 = vst.msk [vmem:[#allocation2 + $0x10] sm:$0xff] %vm39_vm2, %v38_v9  ;;  %v163_v11 = vld [vmem:[#allocation4 + $0x20] sm:$0xff]  ;;  %v164_v12 = vld [vmem:[#allocation4 + $0x28] sm:$0xff]  ;;  %1159 = vset.pattern.permute.xlu1 %v1228_v28  ;;  %v423_v30 = vunpack.c.l.s4 %v1229_v29  ;;  %v1230_v31 = vmov 1  }
  0x17   :  { %v37_v8 = vld [vmem:[%s1413_s1] sm:$0xff]  ;;  %703 = vst.msk [vmem:[#allocation3 + $0x2] sm:$0x3] %vm702_vm1, %v35_v7  ;;  %1063 = vmatpush3.bf16.msra.mxu0 %v1062_v5  ;;  %v1068_v13 = vpack.c.bf16 %v164_v12, %v163_v11  ;;  %v43_v18 = vld [vmem:[%s1414_s2 + $0x8] sm:$0x3f]  ;;  %vm1075_vm4 = vmpackc.low %vm39_vm2, %vm39_vm2  ;;  %1160 = vset.pattern.permute.xlu0 %v1230_v31  ;;  %s1231_s15 = smov 64  }
  0x18   :  { %40 = vst.msk [vmem:[#allocation2] sm:$0xff] %vm39_vm2, %v37_v8  ;;  %1064 = vmatprep.subr.bf16.mxu0 %v1223_v0  ;;  %v166_v15 = vld [vmem:[#allocation4 + $0x38] sm:$0xff]  ;;  %v1327_v33 = vshrl.u32 %v142_v27, 7  ;;  %v424_v34 = vunpack.c.0.s8 %v423_v30  ;;  %v1232_v51 = vmov 1983009808   ;;  %v410_v12 = vand.u32 127, %v142_v27 }
  0x19   :  { %1069 = vmatpush3.bf16.msra.mxu1 %v1068_v13  ;;  %v1071_v16 = vpack.c.bf16 %v166_v15, %v165_v14  ;;  %v42_v17 = vld [vmem:[%s1414_s2] sm:$0x3f]  ;;  %46 = vst.msk [vmem:[#allocation2 + $0x18] sm:$0x3f] %vm44_vm3, %v43_v18  ;;  %s1226_s2 = smov 32   ;;  %v140_v52 = vunpack.c.l.s4 %v1232_v51  ;;  %vm472_vm6 = vcmask 109568  }
  0x1a   :  { %1070 = vmatprep.subr.bf16.mxu1 %v1223_v0  ;;  %45 = vst.msk [vmem:[#allocation2 + $0x8] sm:$0x3f] %vm44_vm3, %v42_v17  ;;  %v928_v32 = vld.sshfl [vmem:[%s1412_s0] sm:$0x11 pattern:$0x75316420]  ;;  %v427_v37 = vsub.s32 %v424_v34, %v1327_v33 }
  0x1b   :  { %1066 = vmatpush3.bf16.msra.mxu0 %v1065_v10  ;;  %v421_v35 = vcombine.high %v928_v32, %v928_v32  ;;  %v239_v36 = vsub.s32 0, %v1327_v33  ;;  %v246_v46 = vsub.s32 1, %v1327_v33  ;;  %v141_v53 = vunpack.c.0.s8 %v140_v52  ;;  %v710_v52 = vld [vmem:[#allocation4 + $0x68] sm:$0xff]  ;;  %s1235_s0 = smov [#allocation7]  }
  0x1c   :  { %1073 = vmatprep.subr.bf16.mxu0 %v1223_v0  ;;  %v428_v38 = vrot.slane %v928_v32, %v427_v37  ;;  %v1233_v54 = vmov 1934713408   ;;  %vm413_vm5 = vcmp.lt.s32.totalorder %v1327_v33, 2  ;;  %vm504_vm9 = vcmask 1045504   ;;  %v813_v28 = vld [vmem:[#allocation4 + $0xe8] sm:$0xff]  ;;  %s911_s18 = sshll.u32 %s1235_s0, 4  ;;  %s912_s18 = int_to_ptr.vmem [resolvable:$true] %s911_s18 }
  0x1d   :  { %1072 = vmatpush3.bf16.msra.mxu1 %v1071_v16  ;;  %v49_v22 = vld [vmem:[#allocation2 + $0x10] sm:$0xff]  ;;  %v435_v39 = vrot.slane %v421_v35, %v427_v37  ;;  %v156_v55 = vunpack.c.l.s4 %v1233_v54  ;;  %v1333_v58 = vsub.s32 %v141_v53, %v1327_v33  ;;  %vm1234_vm10 = vmmov 1   ;;  %s1194_s19 = scalar_lea.vmem %s912_s18, 32  ;;  %p1199_p9 = scmp.lt.s32.totalorder %s912_s18, %s912_s18 }
  0x1e   :  { %985 = vmatmul.mubr.msk.f32.vlgmr.msra.gmra.mrb[0].mxu0 %vm39_vm2, %v35_v7  ;;  %1077 = vmatprep.subr.bf16.mxu1 %v1223_v0  ;;  %v441_v40 = vrot.slane %v428_v38, %v239_v36  ;;  %v436_v41 = vadd.s32 8, %v428_v38  ;;  %vm1353_vm11 = vmpackc.low %vm504_vm9, %vm1234_vm10  ;;  %vm481_vm12 = vcmp.lt.s32.totalorder %v410_v12, 8  ;;  %vm500_vm15 = vcmask 113664   ;;  %v711_v54 = vld [vmem:[#allocation4 + $0x70] sm:$0xff]  ;;  %p1195_p8 = scmp.ne.s32.totalorder %s912_s18, %s1194_s19  ;;  %p1200_p10 = scmp.lt.s32.totalorder %s1194_s19, %s1194_s19 }
  0x1f   :  { %1002 = vmatprep.mubr.msk.f32.mxu0 %vm1224_vm0, %v1225_v1  ;;  %v47_v19 = vld [vmem:[#allocation2] sm:$0xff]  ;;  %v445_v42 = vrot.slane %v435_v39, %v239_v36  ;;  %v437_v44 = vadd.s32 8, %v435_v39  ;;  %v157_v60 = vunpack.c.0.s8 %v156_v55  ;;  %vm482_vm13 = vmxor %vm481_vm12, %vm413_vm5  ;;  %vm699_vm1 = vcmask 785408  }
  0x20   :  { %996 = vmatmul.mubr.msk.f32.vlgmr.msra.gmra.mrb[0].mxu1 %vm39_vm2, %v35_v7  ;;  %v50_v23 = vld [vmem:[#allocation2 + $0x18] sm:$0x3f]  ;;  %v455_v43 = vrot.slane %v436_v41, %v239_v36  ;;  %vm483_vm14 = vmxor %vm482_vm13, %vm1234_vm10  ;;  %p1201_p11 = por %p1200_p10, %p1199_p9 }
  0x21   :  { %1009 = vmatprep.mubr.msk.f32.mxu1 %vm1224_vm0, %v1225_v1  ;;  %v48_v20 = vld [vmem:[#allocation2 + $0x8] sm:$0x3f]  ;;  %v1316_v24 = vpack.c.bf16 %v50_v23, %v49_v22  ;;  %v459_v45 = vrot.slane %v437_v44, %v239_v36  ;;  %v1337_v2 = vsub.s32 %v157_v60, %v1327_v33  ;;  %v712_v55 = vld [vmem:[#allocation4 + $0x78] sm:$0xff] }
  0x22   :  { %v1311_v21 = vpack.c.bf16 %v48_v20, %v47_v19  ;;  %p1202_p12 = pnand %p1201_p11, %p1195_p8 }
  0x24   :  { %1076 = vmatpush3.bf16.xpose.msk.msra.mxu0 %vm1075_vm4, %v1311_v21 }
  0x25   :  { %1089 = vmatprep.subr.bf16.mxu0 %v1223_v0 }
  0x26   :  { %1080 = vmatpush3.bf16.xpose.msk.msra.mxu1 %vm1075_vm4, %v1316_v24 }
  0x27   :  { %1081 = vmatprep.subr.bf16.mxu1 %v1223_v0 }
  0xf1   :  { %v124_v25 = vpop.f32.mrb[0].mxu0 }
  0xf2   :  { %135 = vrot.lane.b32.xlu1 %v124_v25, %s1226_s2  ;;  %129 = vrot.lane.b32.xlu0 %v124_v25, %s1227_s14  ;;  %v986_v26 = vpop.f32.mrb[1].mxu0 }
  0xf3   :  { %v233_v47 = vpop.f32.mrb[0].mxu1 }
  0xf4   :  { %v997_v48 = vpop.f32.mrb[1].mxu1  ;;  %v247_v49 = vrot.slane %v233_v47, %v246_v46  ;;  %v240_v50 = vrot.slane %v233_v47, %v239_v36  ;;  %v705_v46 = vld [vmem:[#allocation4 + $0x40] sm:$0xff]  ;;  %v706_v47 = vld [vmem:[#allocation4 + $0x48] sm:$0xff] }
  0xf5   :  { %v707_v48 = vld [vmem:[#allocation4 + $0x50] sm:$0xff] }
  0xf6   :  { %132 = vrot.lane.b32.xlu0 %v124_v25, %s1231_s15  ;;  %447 = vperm.xlu1 %1159, %v441_v40  }
  0xfa   :  { %461 = vperm.xlu0 %1160, %v455_v43   ;;  %450 = vperm.xlu1 %1159, %v445_v42  }
  0xfe   :  { %1161 = vset.pattern.permute.xlu1 %v1230_v31  ;;  %242 = vbcast.lane.b32.xlu0 %v240_v50, 256  ;;  %v708_v50 = vld [vmem:[#allocation4 + $0x58] sm:$0xff] }
  0xff   :  { %464 = vperm.xlu1 %1161, %v459_v45   ;;  %v1093_v51 = vpack.c.bf16 %v708_v50, %v707_v48  ;;  %v823_v48 = vld [vmem:[#allocation4 + $0x138] sm:$0xff] }
 0x103   :  { %249 = vbcast.lane.b32.xlu1 %v247_v49, 256  ;;  %v1090_v49 = vpack.c.bf16 %v706_v47, %v705_v46 }
 0x164   :  { %v136_v56 = vpop.permute.xlu1 %135  ;;  %v130_v57 = vpop.permute.xlu0 %129 }
 0x165   :  { %v146_v59 = vcombine.low %v130_v57, %v136_v56  ;;  %v1099_v56 = vpack.c.bf16 %v712_v55, %v711_v54  ;;  %v713_v57 = vld [vmem:[#allocation4 + $0x80] sm:$0xff] }
 0x166   :  { %v828_v54 = vld [vmem:[#allocation4 + $0x160] sm:$0xff] }
 0x167   :  { %v153_v63 = vrot.slane %v146_v59, %v1333_v58  ;;  %v714_v59 = vld [vmem:[#allocation4 + $0x88] sm:$0xff] }
 0x168   :  { %v133_v61 = vpop.permute.xlu0 %132  ;;  %v1102_v60 = vpack.c.bf16 %v714_v59, %v713_v57 }
 0x169   :  { %v138_v62 = vcombine.low %v124_v25, %v133_v61  ;;  %v715_v61 = vld [vmem:[#allocation4 + $0x90] sm:$0xff] }
 0x16b   :  { %v145_v3 = vrot.slane %v138_v62, %v1333_v58  ;;  %v716_v62 = vld [vmem:[#allocation4 + $0x98] sm:$0xff] }
 0x16d   :  { %v154_v4 = vcombine.low %v145_v3, %v153_v63  ;;  %v1105_v63 = vpack.c.bf16 %v716_v62, %v715_v61  ;;  %v717_v3 = vld [vmem:[#allocation4 + $0xa0] sm:$0xff]  ;;  %v936_v62 = vld [vmem:[#allocation4 + $0x168] ss:$0 sm:$0xff] }
 0x16f   :  { %v161_v5 = vrot.slane %v154_v4, %v1337_v2  ;;  %v718_v4 = vld [vmem:[#allocation4 + $0xa8] sm:$0xff] }
 0x171   :  { %v162_v6 = vcombine.high %v161_v5, %v1225_v1  ;;  %1003 = vmatmul.mubr.msk.f32.vlgmr.msra.gmra.mrb[2].mxu0 %vm39_vm2, %v161_v5  ;;  %v1108_v5 = vpack.c.bf16 %v718_v4, %v717_v3 }
 0x172   :  { %1091 = vmatpush1.bf16.msra.mxu0 %v1090_v49  ;;  %v824_v49 = vld [vmem:[#allocation4 + $0x140] sm:$0xff] }
 0x173   :  { %1010 = vmatmul.mubr.msk.f32.vlgmr.msra.gmra.mrb[2].mxu1 %vm39_vm2, %v162_v6  ;;  %1092 = vmatprep.subr.bf16.mxu0 %v1223_v0  ;;  %v1135_v50 = vpack.c.bf16 %v824_v49, %v823_v48 }
 0x174   :  { %1016 = vmatprep.mubr.msk.f32.mxu1 %vm1224_vm0, %v1225_v1  ;;  %1084 = vmatpush3.bf16.msk.msra.mxu1 %vm1353_vm11, %v1311_v21 }
 0x175   :  { %v448_v7 = vpop.permute.xlu1 %447  ;;  %1085 = vmatprep.subr.bf16.mxu1 %v1223_v0 }
 0x176   :  { %1094 = vmatpush1.bf16.msra.mxu0 %v1093_v51  ;;  %v825_v51 = vld [vmem:[#allocation4 + $0x148] sm:$0xff] }
 0x177   :  { %1095 = vmatprep.subr.bf16.mxu0 %v1223_v0 }
 0x179   :  { %v451_v8 = vpop.permute.xlu1 %450  ;;  %v462_v9 = vpop.permute.xlu0 %461 }
 0x17a   :  { %v466_v13 = vsel %vm413_vm5, %v448_v7, %v462_v9  ;;  %v720_v9 = vld [vmem:[#allocation4 + $0xb8] sm:$0xff] }
 0x17b   :  { %vm468_vm7 = vcmp.lt.s32.totalorder %v410_v12, %v466_v13 }
 0x17d   :  { %v243_v11 = vpop.permute.xlu0 %242 }
 0x17e   :  { %v465_v10 = vpop.permute.xlu1 %464 }
 0x17f   :  { %v467_v15 = vsel %vm413_vm5, %v451_v8, %v465_v10  ;;  %v719_v8 = vld [vmem:[#allocation4 + $0xb0] sm:$0xff] }
 0x180   :  { %vm469_vm8 = vcmp.lt.s32.totalorder %v410_v12, %v467_v15  ;;  %v1111_v10 = vpack.c.bf16 %v720_v9, %v719_v8  ;;  %v721_v15 = vld [vmem:[#allocation4 + $0xc0] sm:$0xff] }
 0x182   :  { %v250_v18 = vpop.permute.xlu1 %249 }
 0x244   :  { %v326_v14 = vpop.f32.mrb[2].mxu0 }
 0x245   :  { %v327_v16 = vadd.f32 %v326_v14, %v243_v11  ;;  %v1004_v17 = vpop.f32.mrb[3].mxu0 }
 0x246   :  { %v405_v19 = vpop.f32.mrb[2].mxu1 }
 0x247   :  { %v406_v20 = vadd.f32 %v405_v19, %v250_v18  ;;  %v1011_v22 = vpop.f32.mrb[3].mxu1  ;;  %v470_v23 = vsel %vm468_vm7, %v327_v16, -100.0  ;;  %v722_v16 = vld [vmem:[#allocation4 + $0xc8] sm:$0xff]  ;;  %v723_v18 = vld [vmem:[#allocation4 + $0xd0] sm:$0xff]  ;;  %v724_v19 = vld [vmem:[#allocation4 + $0xd8] sm:$0xff] }
 0x248   :  { %v473_v25 = vsel %vm472_vm6, %v470_v23, -inf  ;;  %v1114_v17 = vpack.c.bf16 %v722_v16, %v721_v15 }
 0x249   :  { %474 = vmax.xlane.f32.xlu0 %v473_v25  ;;  %v471_v26 = vsel %vm469_vm8, %v406_v20, -100.0 }
 0x24a   :  { %v476_v27 = vsel %vm472_vm6, %v471_v26, -inf }
 0x24b   :  { %477 = vmax.xlane.f32.xlu1 %v476_v27 }
 0x2d6   :  { %v475_v29 = vpop.xlane.xlu0 %474 }
 0x2d7   :  { %v479_v30 = vsub.f32 %v470_v23, %v475_v29  ;;  %v814_v29 = vld [vmem:[#allocation4 + $0xf0] sm:$0xff] }
 0x2d8   :  { %v478_v31 = vpop.xlane.xlu1 %477 }
 0x2d9   :  { %v484_v32 = vmul.f32 1.442695, %v479_v30  ;;  %v480_v34 = vsub.f32 %v471_v26, %v478_v31  ;;  %v1117_v26 = vpack.c.bf16 %v724_v19, %v723_v18  ;;  %v815_v30 = vld [vmem:[#allocation4 + $0xf8] sm:$0xff]  ;;  %v1120_v31 = vpack.c.bf16 %v814_v29, %v813_v28 }
 0x2db   :  { %1162 = vpow2.f32 %v484_v32  ;;  %v486_v35 = vmul.f32 1.442695, %v480_v34  ;;  %v817_v34 = vld [vmem:[#allocation4 + $0x108] sm:$0xff] }
 0x2dd   :  { %1164 = vpow2.f32 %v486_v35  ;;  %v818_v35 = vld [vmem:[#allocation4 + $0x110] sm:$0xff] }
 0x2e5   :  { %v1163_v36 = vpop.eup %1162 }
 0x2e6   :  { %v488_v37 = vsel %vm483_vm14, %v1163_v36, 0.0  ;;  %v1126_v36 = vpack.c.bf16 %v818_v35, %v817_v34 }
 0x2e7   :  { %v1165_v38 = vpop.eup %1164  ;;  %v490_v21 = vsel %vm472_vm6, %v488_v37, 0.0 }
 0x2e8   :  { %491 = vadd.xlane.f32.xlu0 %v490_v21  ;;  %v489_v39 = vsel %vm483_vm14, %v1165_v38, 0.0  ;;  %v820_v38 = vld [vmem:[#allocation4 + $0x120] sm:$0xff]  ;;  %v821_v21 = vld [vmem:[#allocation4 + $0x128] sm:$0xff] }
 0x2e9   :  { %v493_v40 = vsel %vm472_vm6, %v489_v39, 0.0 }
 0x2ec   :  { %494 = vadd.xlane.f32.xlu0 %v493_v40 }
 0x375   :  { %v492_v41 = vpop.xlane.xlu0 %491 }
 0x376   :  { %1166 = vrcp.f32 %v492_v41 }
 0x379   :  { %v495_v42 = vpop.xlane.xlu0 %494 }
 0x37a   :  { %1168 = vrcp.f32 %v495_v42 }
 0x380   :  { %v1167_v43 = vpop.eup %1166 }
 0x381   :  { %v498_v44 = vmul.f32 %v1167_v43, %v488_v37  ;;  %v819_v37 = vld [vmem:[#allocation4 + $0x118] sm:$0xff] }
 0x383   :  { %1017 = vmatmul.mubr.msk.f32.vlgmr.msra.gmra.mrb[4].mxu1 %vm500_vm15, %v498_v44 }
 0x384   :  { %v1169_v33 = vpop.eup %1168  ;;  %1088 = vmatpush3.bf16.msk.msra.mxu1 %vm1353_vm11, %v1316_v24  ;;  %1023 = vmatprep.mubr.msk.f32.mxu1 %vm1224_vm0, %v1225_v1  ;;  %v709_v24 = vld [vmem:[#allocation4 + $0x60] sm:$0xff] }
 0x385   :  { %v499_v45 = vmul.f32 %v1169_v33, %v489_v39  ;;  %1119 = vmatprep.subr.bf16.mxu1 %v1223_v0  ;;  %v1096_v53 = vpack.c.bf16 %v710_v52, %v709_v24  ;;  %v822_v39 = vld [vmem:[#allocation4 + $0x130] sm:$0xff] }
 0x386   :  { %v1132_v40 = vpack.c.bf16 %v822_v39, %v821_v21  ;;  %v826_v24 = vld [vmem:[#allocation4 + $0x150] sm:$0xff] }
 0x387   :  { %1024 = vmatmul.mubr.msk.f32.vlgmr.msra.gmra.mrb[6].mxu1 %vm500_vm15, %v499_v45  ;;  %1097 = vmatpush1.bf16.msra.mxu0 %v1096_v53  ;;  %v1138_v52 = vpack.c.bf16 %v826_v24, %v825_v51  ;;  %v827_v53 = vld [vmem:[#allocation4 + $0x158] sm:$0xff] }
 0x388   :  { %1058 = vmatprep.mubr.msk.f32.mxu1 %vm1224_vm0, %v1225_v1  ;;  %1098 = vmatprep.subr.bf16.mxu0 %v1223_v0  ;;  %vm697_vm0 = vcmask 523264   ;;  %v1141_v55 = vpack.c.bf16 %v828_v54, %v827_v53 }
 0x389   :  { %1121 = vmatpush3.bf16.msra.mxu1 %v1120_v31 }
 0x38a   :  { %1122 = vmatprep.subr.bf16.mxu1 %v1223_v0 }
 0x38b   :  { %1100 = vmatpush1.bf16.msra.mxu0 %v1099_v56  ;;  %v933_v56 = vld [vmem:[#allocation4 + $0xe0] ss:$0 sm:$0xff] }
 0x38c   :  { %1101 = vmatprep.subr.bf16.mxu0 %v1223_v0 }
 0x38f   :  { %1103 = vmatpush1.bf16.msra.mxu0 %v1102_v60 }
 0x390   :  { %1104 = vmatprep.subr.bf16.mxu0 %v1223_v0 }
 0x393   :  { %1106 = vmatpush1.bf16.msra.mxu0 %v1105_v63 }
 0x394   :  { %1107 = vmatprep.subr.bf16.mxu0 %v1223_v0 }
 0x397   :  { %1109 = vmatpush1.bf16.msra.mxu0 %v1108_v5 }
 0x398   :  { %1110 = vmatprep.subr.bf16.mxu0 %v1223_v0 }
 0x39b   :  { %1112 = vmatpush1.bf16.msra.mxu0 %v1111_v10 }
 0x39c   :  { %1113 = vmatprep.subr.bf16.mxu0 %v1223_v0 }
 0x39f   :  { %1115 = vmatpush1.bf16.msra.mxu0 %v1114_v17 }
 0x3a0   :  { %1116 = vmatprep.subr.bf16.mxu0 %v1223_v0 }
 0x3a3   :  { %1118 = vmatpush1.bf16.msra.mxu0 %v1117_v26 }
 0x456   :  { %v573_v6 = vpop.f32.mrb[4].mxu1 }
 0x457   :  { %v1018_v7 = vpop.f32.mrb[5].mxu1  ;;  %v658_v12 = vrot.slane %v573_v6, %v1333_v58 }
 0x45a   :  { %v648_v11 = vpop.f32.mrb[6].mxu1 }
 0x45b   :  { %v665_v13 = vrot.slane %v648_v11, %v1333_v58  ;;  %v1025_v14 = vpop.f32.mrb[7].mxu1 }
 0x45d   :  { %v666_v20 = vcombine.low %v658_v12, %v665_v13  ;;  %v667_v22 = vcombine.high %v658_v12, %v665_v13 }
 0x45f   :  { %v674_v23 = vrot.slane %v666_v20, %v1337_v2  ;;  %v681_v25 = vrot.slane %v667_v22, %v1337_v2  ;;  %v816_v2 = vld [vmem:[#allocation4 + $0x100] sm:$0xff] }
 0x460   :  { %v1123_v32 = vpack.c.bf16 %v816_v2, %v815_v30 }
 0x461   :  { %689 = vrot.lane.b32.xlu0 %v681_v25, %s1231_s15  ;;  %v682_v58 = vcombine.high %v674_v23, %v1225_v1  ;;  %v683_v27 = vcombine.high %v681_v25, %v1225_v1  ;;  %v1129_v1 = vpack.c.bf16 %v820_v38, %v819_v37 }
 0x462   :  { %1124 = vmatpush3.bf16.msra.mxu1 %v1123_v32 }
 0x463   :  { %685 = vrot.lane.b32.xlu1 %v682_v58, %s1226_s2  ;;  %1125 = vmatprep.subr.bf16.mxu1 %v1223_v0 }
 0x466   :  { %1127 = vmatpush3.bf16.msra.mxu1 %v1126_v36 }
 0x467   :  { %693 = vrot.lane.b32.xlu1 %v683_v27, %s1227_s14  ;;  %1128 = vmatprep.subr.bf16.mxu1 %v1223_v0 }
 0x46a   :  { %1130 = vmatpush3.bf16.msra.mxu1 %v1129_v1 }
 0x46b   :  { %1131 = vmatprep.subr.bf16.mxu1 %v1223_v0 }
 0x46e   :  { %1133 = vmatpush3.bf16.msra.mxu1 %v1132_v40 }
 0x46f   :  { %1134 = vmatprep.subr.bf16.mxu1 %v1223_v0 }
 0x472   :  { %1136 = vmatpush3.bf16.msra.mxu1 %v1135_v50 }
 0x473   :  { %1137 = vmatprep.subr.bf16.mxu1 %v1223_v0 }
 0x476   :  { %1139 = vmatpush3.bf16.msra.mxu1 %v1138_v52 }
 0x477   :  { %1140 = vmatprep.subr.bf16.mxu1 %v1223_v0 }
 0x47a   :  { %1142 = vmatpush3.bf16.msra.mxu1 %v1141_v55 }
 0x4d3   :  { %v690_v43 = vpop.permute.xlu0 %689 }
 0x4d5   :  { %v686_v41 = vpop.permute.xlu1 %685 }
 0x4d6   :  { %v696_v42 = vsel %vm39_vm2, %v674_v23, %v686_v41 }
 0x4d7   :  { %v698_v44 = vsel %vm697_vm0, %v696_v42, %v690_v43 }
 0x4d9   :  { %v694_v33 = vpop.permute.xlu1 %693 }
 0x4da   :  { %v700_v45 = vsel %vm699_vm1, %v698_v44, %v694_v33 }
 0x4db   :  { %701 = vst [vmem:[#allocation3] sm:$0x3] %v700_v45 }
 0x4e2   :  { %v934_v46 = vld.sshfl [vmem:[#allocation3] sm:$0x33 pattern:$0x76325410] }
 0x4e3   :  { %v738_v47 = vcombine.high %v934_v46, %v934_v46 }
 0x4e5   :  { %935 = vmatprep.mubr.msk.f32.mxu0 %vm39_vm2, %v738_v47 }
 0x4e6   :  { %807 = vmatmul.mubr.f32.vlgmr.msra.gmra.mrb[4].mxu0 %v934_v46 }
 0x5b9   :  { %v808_v57 = vpop.f32.mrb[4].mxu0 }
 0x5ba   :  { %v809_v59 = vadd.f32 %v933_v56, %v808_v57  ;;  %v810_v60 = vpop.f32.mrb[5].mxu0 }
 0x5bc   :  { %1170 = vtanh.f32 %v809_v59 }
 0x5c6   :  { %v1171_v61 = vpop.eup %1170 }
 0x5c7   :  { %1059 = vmatmul.mubr.f32.vlgmr.msra.gmra.mrb[8].mxu1 %v1171_v61 }
 0x69a   :  { %v900_v63 = vpop.f32.mrb[8].mxu1 }
 0x69b   :  { %v901_v3 = vadd.f32 %v936_v62, %v900_v63  ;;  %v1060_v4 = vpop.f32.mrb[9].mxu1 }
 0x69d   :  { %904 = vst [vmem:[#allocation7] sm:$0x3] %v901_v3 }
 0x69e   :  { %1205 = shalt.err (!%p1202_p12)
}
 0x69f   :  { %s1206_s22 = scalar_lea.hbm %s1417_s5, 32 }
 0x6a0   :  { %p1207_p13 = scmp.ne.s32.totalorder %s1417_s5, %s1206_s22  ;;  %p1210_p0 = scmp.lt.u32.totalorder %s1206_s22, %s1417_s5 }
 0x6a2   :  { %p1212_p1 = pnand %p1210_p0, %p1207_p13 }
 0x6a4   :  { %1215 = shalt.err (!%p1212_p1)
}
 0x6a5   :  { %914 = dma.vmem_to_hbm [thread:$0]  %s912_s18, 32, %s1417_s5, [#allocation6]  }
 0x6a6   :  { %1218 = dma.done.wait [#allocation6], 32  }
 0x6a7   :  { %1219 = vsyncadd [#allocation6], 4294967264 }
 0x6a8   :  { %918 = vsyncpa [#allocation5], 1 }
 0x6a9   :  { %919 = vsyncpa [#allocation6], 1 }

</bundles_post_ra>
